<compile_context>
chip_gen: v7x
topology: tpu7x:2x2x1
jax: 0.10.0
libtpu: 0.0.40
codegen_flags: <defaults>
</compile_context>

<pallas_src>
import functools

import jax
import jax.numpy as jnp
from jax import lax
from jax.experimental import pallas as pl
from jax.experimental.pallas import tpu as pltpu

# Geometry of the 7x7x3 minigrid observation (conv3 output is spatially 1x1, so the
# NHWC flatten equals PyTorch's NCHW flatten).
_H, _W, _CIN = 7, 7, 3
_C1, _C2, _C3 = 16, 32, 64
_W1 = _W - 1            # conv1 output width  (6)
_WP = _W1 // 2          # pooled width        (3)
_W2 = _WP - 1           # conv2 output width  (2)
_HIDDEN = 64            # actor/critic hidden width


# ------------------------------ fused Pallas kernel ------------------------------ #

def _fused_forward_kernel(img_ref,
                          w1_ref, b1_ref, w2_ref, b2_ref, w3_ref, b3_ref,
                          wh1_ref, bh1_ref, wh2_ref, bh2_ref,
                          out_ref, *, bb, n_actions, out_w):
    f32 = jnp.float32
    bf16 = jnp.bfloat16

    def mm(a, w_ref):
        # bf16 operands (weights are stored bf16), f32 accumulation on the MXU.
        return jnp.dot(a.astype(bf16), w_ref[...], preferred_element_type=f32)

    # Image block: (7*bb, 21); row r = y*bb + b, lane = x*3 + c.
    x0 = img_ref[...]

    # --- Conv2d(3, 16, 2x2) + ReLU: one fused block-Toeplitz matmul (K = 42).
    t1 = jnp.concatenate([x0[:6 * bb], x0[bb:]], axis=1)            # (6bb, 42)
    c1 = jnp.maximum(mm(t1, w1_ref) + b1_ref[...], 0.0)             # (6bb, 96); lane = x*16 + c

    # --- MaxPool2d(2, 2): x-direction on lanes, y-direction on bb-row blocks (VPU only).
    hx = jnp.maximum(c1[:, :(_W1 - 1) * _C1], c1[:, _C1:])          # (6bb, 80); pooled x at even blocks
    p0 = jnp.maximum(hx[0 * bb:1 * bb], hx[1 * bb:2 * bb])          # pooled row yp = 0
    p1 = jnp.maximum(hx[2 * bb:3 * bb], hx[3 * bb:4 * bb])          # pooled row yp = 1
    p2 = jnp.maximum(hx[4 * bb:5 * bb], hx[5 * bb:6 * bb])          # pooled row yp = 2

    # --- Conv2d(16, 32, 2x2) + ReLU: one fused matmul (K = 160).  The Toeplitz weight
    # has zero blocks on the garbage x lanes of hx, so they never contribute.
    t2 = jnp.concatenate([jnp.concatenate([p0, p1], axis=0),
                          jnp.concatenate([p1, p2], axis=0)], axis=1)   # (2bb, 160)
    c2 = jnp.maximum(mm(t2, w2_ref) + b2_ref[...], 0.0)             # (2bb, 64); row = i*bb + b

    # --- Conv2d(32, 64, 2x2) + ReLU: one fused matmul (K = 128); output is spatially
    # 1x1, so this is directly the (bb, 64) embedding -- no gather needed.
    t3 = jnp.concatenate([c2[:bb], c2[bb:]], axis=1)                # (bb, 128)
    emb = jnp.maximum(mm(t3, w3_ref) + b3_ref[...], 0.0)            # (bb, 64)

    # --- Actor + critic heads, packed lane-dense.
    h = jnp.tanh(mm(emb, wh1_ref) + bh1_ref[...])                   # (bb, 128) = [tanh actor | tanh critic]
    o2 = mm(h, wh2_ref) + bh2_ref[...]                              # (bb, n_actions + 1)
    logits = o2[:, :n_actions]
    z = logits - jnp.max(logits, axis=1, keepdims=True)
    logp = z - jnp.log(jnp.sum(jnp.exp(z), axis=1, keepdims=True))

    # --- Single lane-dense output slab: [log-probs | value | embedding | zero pad].
    pieces = [logp, o2[:, n_actions:], emb]
    pad = out_w - (n_actions + 1 + _C3)
    if pad:
        pieces.append(jnp.zeros((bb, pad), f32))
    out_ref[...] = jnp.concatenate(pieces, axis=1)


# ----------------------------- parameter repacking ------------------------------- #

def _row_conv_tap_weights(w, n_in_pos, n_out_pos, spacing):
    """Block-Toeplitz matrices for a 2x2 conv over a row-major activation layout
    (lane = position*cin + c).  Returns one (n_in_pos*cin, n_out_pos*cout) matrix per
    kernel row di, so summing `act_row(y+di) @ W_di` over di yields every output x
    position of that conv row in one lane-dense result."""
    kh, kw, cin, cout = w.shape
    mats = []
    for di in range(kh):
        big = jnp.zeros((n_in_pos, cin, n_out_pos, cout), w.dtype)
        for dj in range(kw):
            for x in range(n_out_pos):
                big = big.at[spacing * (x + dj), :, x, :].set(w[di, dj])
        mats.append(big.reshape(n_in_pos * cin, n_out_pos * cout))
    return mats


def pack_params(params):
    """One-time repack into the lane-dense / fused block-Toeplitz layout the kernel
    consumes.  Matmul weights are stored bf16 (f32 accumulation in-kernel); biases
    stay f32 (they are added on the VPU)."""
    bf16 = jnp.bfloat16
    n_actions = params["actor2_w"].shape[1]
    w1a, w1b = _row_conv_tap_weights(params["conv1_w"], _W, _W1, spacing=1)
    w2a, w2b = _row_conv_tap_weights(params["conv2_w"], _W1 - 1, _W2, spacing=2)
    w3a, w3b = _row_conv_tap_weights(params["conv3_w"], 2, 1, spacing=1)
    wh2 = jnp.zeros((2 * _HIDDEN, n_actions + 1), jnp.float32)
    wh2 = wh2.at[:_HIDDEN, :n_actions].set(params["actor2_w"])
    wh2 = wh2.at[_HIDDEN:, n_actions:].set(params["critic2_w"])
    return {
        "w1": jnp.concatenate([w1a, w1b], axis=0).astype(bf16),                    # (42, 96)
        "b1": jnp.tile(params["conv1_b"], _W1).reshape(1, -1),                     # (1, 96)
        "w2": jnp.concatenate([w2a, w2b], axis=0).astype(bf16),                    # (160, 64)
        "b2": jnp.tile(params["conv2_b"], _W2).reshape(1, -1),                     # (1, 64)
        "w3": jnp.concatenate([w3a, w3b], axis=0).astype(bf16),                    # (128, 64)
        "b3": params["conv3_b"].reshape(1, -1),                                    # (1, 64)
        "wh1": jnp.concatenate([params["actor1_w"], params["critic1_w"]], axis=1).astype(bf16),  # (64, 128)
        "bh1": jnp.concatenate([params["actor1_b"], params["critic1_b"]]).reshape(1, -1),        # (1, 128)
        "wh2": wh2.astype(bf16),                                                   # (128, n_actions+1)
        "bh2": jnp.concatenate([params["actor2_b"], params["critic2_b"]]).reshape(1, -1),        # (1, n_actions+1)
    }


_PACKED_ORDER = ("w1", "b1", "w2", "b2", "w3", "b3", "wh1", "bh1", "wh2", "bh2")


# --------------------------------- forward wrapper -------------------------------- #

def _choose_blocking(batch):
    """Pick (block_batch, padded_batch).  Blocks are multiples of 8 (sublane-aligned)
    up to 512; keep >= 2 grid steps whenever the batch allows so the 'parallel' batch
    axis can shard across v7x's two TensorCores; ragged batches are padded up instead
    of falling back to bb = batch."""
    bb = max(8, min(512, pl.next_power_of_2(max(int(batch), 1)) // 2))
    padded = pl.cdiv(batch, bb) * bb
    return bb, padded


def acmodel_block_forward(image, memory, mu_sig_memory, packed):
    """Matches ACModel_Block.forward with use_memory=False, use_text=False.
    Returns (dist_log_probs, value, memory, x)."""
    # TODO(synk): the LSTM memory branch (use_memory=True) and GRU text branch
    # (use_text=True) are disabled in this configuration and not implemented here.
    del mu_sig_memory
    batch = image.shape[0]
    assert image.shape[1:] == (_H, _W, _CIN), "kernel is specialised to the 7x7x3 minigrid obs"
    n_actions = packed["wh2"].shape[1] - 1
    out_w = pl.cdiv(n_actions + 1 + _C3, 128) * 128     # lane-dense output slab width
    bb, padded = _choose_blocking(batch)
    n_blocks = padded // bb
    weights = [packed[k] for k in _PACKED_ORDER]

    if padded != batch:
        image = jnp.concatenate(
            [image, jnp.zeros((padded - batch,) + image.shape[1:], image.dtype)], axis=0)

    # y-major row layout inside each batch block: row = y*bb + b.  This is tiny
    # wrapper-side layout plumbing (B*147 floats) done by XLA outside the kernel,
    # and it is what removes the in-kernel batch gather entirely.
    img2d = (image.reshape(n_blocks, bb, _H, _W * _CIN)
                  .transpose(0, 2, 1, 3)
                  .reshape(n_blocks * _H * bb, _W * _CIN))

    def whole(arr):
        return pl.BlockSpec(arr.shape, lambda i: (0, 0))

    out = pl.pallas_call(
        functools.partial(_fused_forward_kernel, bb=bb, n_actions=n_actions, out_w=out_w),
        grid=(n_blocks,),
        in_specs=[pl.BlockSpec((_H * bb, _W * _CIN), lambda i: (i, 0))]
                 + [whole(w) for w in weights],
        out_specs=pl.BlockSpec((bb, out_w), lambda i: (i, 0)),
        out_shape=jax.ShapeDtypeStruct((padded, out_w), jnp.float32),
        compiler_params=pltpu.CompilerParams(dimension_semantics=("parallel",)),
    )(img2d, *weights)

    logp = out[:batch, :n_actions]
    value = out[:batch, n_actions]
    x = out[:batch, n_actions + 1:n_actions + 1 + _C3]
    return logp, value, memory, x


# -------------------------------- parameter creation ------------------------------ #

def make_params(key, n_actions, embedding_size):
    ks = jax.random.split(key, 10)

    def conv_w(k, cin, cout):
        fan_in = 2 * 2 * cin
        w = jax.random.uniform(k, (2, 2, cin, cout), minval=-1.0, maxval=1.0)
        return (w / jnp.sqrt(float(fan_in))).astype(jnp.float32)

    def conv_b(k, cout):
        return jax.random.uniform(k, (cout,), minval=-0.1, maxval=0.1).astype(jnp.float32)

    def linear_w(k, cin, cout):
        # init_params: normal(0,1), row-normalized (rows = output units); bias = 0
        w = jax.random.normal(k, (cout, cin))
        w = w / jnp.sqrt(jnp.sum(w * w, axis=1, keepdims=True))
        return w.T.astype(jnp.float32)          # stored (cin, cout) so kernel does x @ w

    return {
        "conv1_w": conv_w(ks[0], _CIN, _C1), "conv1_b": conv_b(ks[1], _C1),
        "conv2_w": conv_w(ks[2], _C1, _C2),  "conv2_b": conv_b(ks[3], _C2),
        "conv3_w": conv_w(ks[4], _C2, _C3),  "conv3_b": conv_b(ks[5], _C3),
        "actor1_w": linear_w(ks[6], embedding_size, _HIDDEN),
        "actor1_b": jnp.zeros((_HIDDEN,), jnp.float32),
        "actor2_w": linear_w(ks[7], _HIDDEN, n_actions),
        "actor2_b": jnp.zeros((n_actions,), jnp.float32),
        "critic1_w": linear_w(ks[8], embedding_size, _HIDDEN),
        "critic1_b": jnp.zeros((_HIDDEN,), jnp.float32),
        "critic2_w": linear_w(ks[9], _HIDDEN, 1),
        "critic2_b": jnp.zeros((1,), jnp.float32),
    }


# -------------------------------- pure-JAX reference ------------------------------ #

def reference_forward(image, params):
    def conv2x2(x, w, b):
        patches = jnp.concatenate(
            [x[:, di:x.shape[1] - 1 + di, dj:x.shape[2] - 1 + dj, :]
             for di in range(2) for dj in range(2)], axis=-1)
        y = jnp.einsum("bhwk,ko->bhwo", patches, w.reshape(-1, w.shape[-1]),
                       precision=lax.Precision.HIGHEST)
        return y + b

    x = jax.nn.relu(conv2x2(image, params["conv1_w"], params["conv1_b"]))
    b, h1, w1, c = x.shape
    hp, wp = h1 // 2, w1 // 2
    x = x[:, :hp * 2, :wp * 2, :].reshape(b, hp, 2, wp, 2, c).max(axis=(2, 4))
    x = jax.nn.relu(conv2x2(x, params["conv2_w"], params["conv2_b"]))
    x = jax.nn.relu(conv2x2(x, params["conv3_w"], params["conv3_b"]))
    x = x.reshape(b, -1)
    mm = functools.partial(jnp.dot, precision=lax.Precision.HIGHEST)
    ha = jnp.tanh(mm(x, params["actor1_w"]) + params["actor1_b"])
    logits = mm(ha, params["actor2_w"]) + params["actor2_b"]
    logp = jax.nn.log_softmax(logits, axis=-1)
    hc = jnp.tanh(mm(x, params["critic1_w"]) + params["critic1_b"])
    value = (mm(hc, params["critic2_w"]) + params["critic2_b"])[:, 0]
    return logp, value, x


# --------------------------------------- main ------------------------------------- #

if __name__ == "__main__":
    key = jax.random.PRNGKey(0)
    k_img, k_par, k_mem, k_mu = jax.random.split(key, 4)

    B = 2
    n_actions = 7
    image_embedding_size = ((_H - 1) // 2 - 2) * ((_W - 1) // 2 - 2) * _C3   # = 64
    memory_size = 2 * image_embedding_size                                    # = 128
    block_mu_size = 64

    image = jax.random.uniform(k_img, (B, _H, _W, _CIN), dtype=jnp.float32) * 10.0
    memory = jax.random.normal(k_mem, (B, memory_size), dtype=jnp.float32)
    mu_sig_memory = jax.random.normal(k_mu, (B, 2 * block_mu_size), dtype=jnp.float32)

    params = make_params(k_par, n_actions, image_embedding_size)
    packed = pack_params(params)      # one-time lane-dense / fused block-Toeplitz repacking

    fwd = jax.jit(functools.partial(acmodel_block_forward, packed=packed))
    log_probs, value, memory_out, x_emb = fwd(image, memory, mu_sig_memory)
    jax.block_until_ready((log_probs, value, memory_out, x_emb))

    # shape checks
    assert log_probs.shape == (B, n_actions)
    assert value.shape == (B,)
    assert memory_out.shape == (B, memory_size)
    assert x_emb.shape == (B, image_embedding_size)
    # log_softmax rows sum to 1 in prob space
    assert bool(jnp.all(jnp.abs(jnp.sum(jnp.exp(log_probs), axis=1) - 1.0) < 1e-4))
    # numerical check against a pure-JAX reference (tolerances account for the
    # deliberate bf16 matmul operands with f32 accumulation)
    ref_logp, ref_value, ref_x = reference_forward(image, params)
    assert bool(jnp.allclose(log_probs, ref_logp, rtol=2e-2, atol=5e-2))
    assert bool(jnp.allclose(value, ref_value, rtol=2e-2, atol=5e-2))
    assert bool(jnp.allclose(x_emb, ref_x, rtol=2e-2, atol=2.5e-1))
    print("KERNEL_OK")
</pallas_src>

<mosaic_0001>
module attributes {stable_mosaic.version = 11 : i64} {
  func.func @_fused_forward_kernel(%arg0: i32, %arg1: memref<56x21xf32, #tpu.memory_space<vmem>>, %arg2: memref<42x96xbf16, #tpu.memory_space<vmem>>, %arg3: memref<1x96xf32, #tpu.memory_space<vmem>>, %arg4: memref<160x64xbf16, #tpu.memory_space<vmem>>, %arg5: memref<1x64xf32, #tpu.memory_space<vmem>>, %arg6: memref<128x64xbf16, #tpu.memory_space<vmem>>, %arg7: memref<1x64xf32, #tpu.memory_space<vmem>>, %arg8: memref<64x128xbf16, #tpu.memory_space<vmem>>, %arg9: memref<1x128xf32, #tpu.memory_space<vmem>>, %arg10: memref<128x8xbf16, #tpu.memory_space<vmem>>, %arg11: memref<1x8xf32, #tpu.memory_space<vmem>>, %arg12: memref<8x128xf32, #tpu.memory_space<vmem>>) attributes {dimension_semantics = [#tpu.dimension_semantics<parallel>], iteration_bounds = array<i64: 1>, scalar_prefetch = 0 : i64, scratch_operands = 0 : i64, tpu.core_type = #tpu.core_type<tc>, window_params = [{transform_indices = @transform_0, window_bounds = array<i64: 56, 21>}, {pipeline_mode = #tpu.pipeline_mode<synchronous>, transform_indices = @transform_1, window_bounds = array<i64: 42, 96>}, {pipeline_mode = #tpu.pipeline_mode<synchronous>, transform_indices = @transform_2, window_bounds = array<i64: 1, 96>}, {pipeline_mode = #tpu.pipeline_mode<synchronous>, transform_indices = @transform_3, window_bounds = array<i64: 160, 64>}, {pipeline_mode = #tpu.pipeline_mode<synchronous>, transform_indices = @transform_4, window_bounds = array<i64: 1, 64>}, {pipeline_mode = #tpu.pipeline_mode<synchronous>, transform_indices = @transform_5, window_bounds = array<i64: 128, 64>}, {pipeline_mode = #tpu.pipeline_mode<synchronous>, transform_indices = @transform_6, window_bounds = array<i64: 1, 64>}, {pipeline_mode = #tpu.pipeline_mode<synchronous>, transform_indices = @transform_7, window_bounds = array<i64: 64, 128>}, {pipeline_mode = #tpu.pipeline_mode<synchronous>, transform_indices = @transform_8, window_bounds = array<i64: 1, 128>}, {pipeline_mode = #tpu.pipeline_mode<synchronous>, transform_indices = @transform_9, window_bounds = array<i64: 128, 8>}, {pipeline_mode = #tpu.pipeline_mode<synchronous>, transform_indices = @transform_10, window_bounds = array<i64: 1, 8>}, {transform_indices = @transform_11, window_bounds = array<i64: 8, 128>}]} {
    %c0 = arith.constant 0 : index
    %c0_0 = arith.constant 0 : index
    %0 = vector.load %arg1[%c0, %c0_0] : memref<56x21xf32, #tpu.memory_space<vmem>>, vector<56x21xf32>
    %1 = vector.extract_strided_slice %0 {offsets = [0, 0], sizes = [48, 21], strides = [1, 1]} : vector<56x21xf32> to vector<48x21xf32>
    %2 = vector.extract_strided_slice %0 {offsets = [8, 0], sizes = [48, 21], strides = [1, 1]} : vector<56x21xf32> to vector<48x21xf32>
    %3 = tpu.concatenate %1, %2 in 1 : vector<48x21xf32>, vector<48x21xf32> -> vector<48x42xf32>
    %4 = arith.truncf %3 : vector<48x42xf32> to vector<48x42xbf16>
    %c0_1 = arith.constant 0 : index
    %c0_2 = arith.constant 0 : index
    %5 = vector.load %arg2[%c0_1, %c0_2] : memref<42x96xbf16, #tpu.memory_space<vmem>>, vector<42x96xbf16>
    %cst = arith.constant dense<0.000000e+00> : vector<48x96xf32>
    %6 = tpu.matmul %4, %5, %cst {dimension_numbers = #tpu.dot_dimension_numbers<[1], [0], [0], [1], [0, 0, 1, 1], [], []>} : vector<48x42xbf16>, vector<42x96xbf16>, vector<48x96xf32> -> vector<48x96xf32>
    %c0_3 = arith.constant 0 : index
    %c0_4 = arith.constant 0 : index
    %7 = vector.load %arg3[%c0_3, %c0_4] : memref<1x96xf32, #tpu.memory_space<vmem>>, vector<1x96xf32>
    %8 = vector.broadcast %7 : vector<1x96xf32> to vector<48x96xf32>
    %9 = arith.addf %6, %8 : vector<48x96xf32>
    %cst_5 = arith.constant 0.000000e+00 : f32
    %10 = vector.broadcast %cst_5 : f32 to vector<48x96xf32>
    %11 = arith.maximumf %9, %10 : vector<48x96xf32>
    %12 = vector.extract_strided_slice %11 {offsets = [0, 0], sizes = [48, 80], strides = [1, 1]} : vector<48x96xf32> to vector<48x80xf32>
    %13 = vector.extract_strided_slice %11 {offsets = [0, 16], sizes = [48, 80], strides = [1, 1]} : vector<48x96xf32> to vector<48x80xf32>
    %14 = arith.maximumf %12, %13 : vector<48x80xf32>
    %15 = vector.extract_strided_slice %14 {offsets = [0, 0], sizes = [8, 80], strides = [1, 1]} : vector<48x80xf32> to vector<8x80xf32>
    %16 = vector.extract_strided_slice %14 {offsets = [8, 0], sizes = [8, 80], strides = [1, 1]} : vector<48x80xf32> to vector<8x80xf32>
    %17 = arith.maximumf %15, %16 : vector<8x80xf32>
    %18 = vector.extract_strided_slice %14 {offsets = [16, 0], sizes = [8, 80], strides = [1, 1]} : vector<48x80xf32> to vector<8x80xf32>
    %19 = vector.extract_strided_slice %14 {offsets = [24, 0], sizes = [8, 80], strides = [1, 1]} : vector<48x80xf32> to vector<8x80xf32>
    %20 = arith.maximumf %18, %19 : vector<8x80xf32>
    %21 = vector.extract_strided_slice %14 {offsets = [32, 0], sizes = [8, 80], strides = [1, 1]} : vector<48x80xf32> to vector<8x80xf32>
    %22 = vector.extract_strided_slice %14 {offsets = [40, 0], sizes = [8, 80], strides = [1, 1]} : vector<48x80xf32> to vector<8x80xf32>
    %23 = arith.maximumf %21, %22 : vector<8x80xf32>
    %24 = tpu.concatenate %17, %20 in 0 : vector<8x80xf32>, vector<8x80xf32> -> vector<16x80xf32>
    %25 = tpu.concatenate %20, %23 in 0 : vector<8x80xf32>, vector<8x80xf32> -> vector<16x80xf32>
    %26 = tpu.concatenate %24, %25 in 1 : vector<16x80xf32>, vector<16x80xf32> -> vector<16x160xf32>
    %27 = arith.truncf %26 : vector<16x160xf32> to vector<16x160xbf16>
    %c0_6 = arith.constant 0 : index
    %c0_7 = arith.constant 0 : index
    %28 = vector.load %arg4[%c0_6, %c0_7] : memref<160x64xbf16, #tpu.memory_space<vmem>>, vector<160x64xbf16>
    %cst_8 = arith.constant dense<0.000000e+00> : vector<16x64xf32>
    %29 = tpu.matmul %27, %28, %cst_8 {dimension_numbers = #tpu.dot_dimension_numbers<[1], [0], [0], [1], [0, 0, 1, 1], [], []>} : vector<16x160xbf16>, vector<160x64xbf16>, vector<16x64xf32> -> vector<16x64xf32>
    %c0_9 = arith.constant 0 : index
    %c0_10 = arith.constant 0 : index
    %30 = vector.load %arg5[%c0_9, %c0_10] : memref<1x64xf32, #tpu.memory_space<vmem>>, vector<1x64xf32>
    %31 = vector.broadcast %30 : vector<1x64xf32> to vector<16x64xf32>
    %32 = arith.addf %29, %31 : vector<16x64xf32>
    %cst_11 = arith.constant 0.000000e+00 : f32
    %33 = vector.broadcast %cst_11 : f32 to vector<16x64xf32>
    %34 = arith.maximumf %32, %33 : vector<16x64xf32>
    %35 = vector.extract_strided_slice %34 {offsets = [0, 0], sizes = [8, 64], strides = [1, 1]} : vector<16x64xf32> to vector<8x64xf32>
    %36 = vector.extract_strided_slice %34 {offsets = [8, 0], sizes = [8, 64], strides = [1, 1]} : vector<16x64xf32> to vector<8x64xf32>
    %37 = tpu.concatenate %35, %36 in 1 : vector<8x64xf32>, vector<8x64xf32> -> vector<8x128xf32>
    %38 = arith.truncf %37 : vector<8x128xf32> to vector<8x128xbf16>
    %c0_12 = arith.constant 0 : index
    %c0_13 = arith.constant 0 : index
    %39 = vector.load %arg6[%c0_12, %c0_13] : memref<128x64xbf16, #tpu.memory_space<vmem>>, vector<128x64xbf16>
    %cst_14 = arith.constant dense<0.000000e+00> : vector<8x64xf32>
    %40 = tpu.matmul %38, %39, %cst_14 {dimension_numbers = #tpu.dot_dimension_numbers<[1], [0], [0], [1], [0, 0, 1, 1], [], []>} : vector<8x128xbf16>, vector<128x64xbf16>, vector<8x64xf32> -> vector<8x64xf32>
    %c0_15 = arith.constant 0 : index
    %c0_16 = arith.constant 0 : index
    %41 = vector.load %arg7[%c0_15, %c0_16] : memref<1x64xf32, #tpu.memory_space<vmem>>, vector<1x64xf32>
    %42 = vector.broadcast %41 : vector<1x64xf32> to vector<8x64xf32>
    %43 = arith.addf %40, %42 : vector<8x64xf32>
    %cst_17 = arith.constant 0.000000e+00 : f32
    %44 = vector.broadcast %cst_17 : f32 to vector<8x64xf32>
    %45 = arith.maximumf %43, %44 : vector<8x64xf32>
    %46 = arith.truncf %45 : vector<8x64xf32> to vector<8x64xbf16>
    %c0_18 = arith.constant 0 : index
    %c0_19 = arith.constant 0 : index
    %47 = vector.load %arg8[%c0_18, %c0_19] : memref<64x128xbf16, #tpu.memory_space<vmem>>, vector<64x128xbf16>
    %cst_20 = arith.constant dense<0.000000e+00> : vector<8x128xf32>
    %48 = tpu.matmul %46, %47, %cst_20 {dimension_numbers = #tpu.dot_dimension_numbers<[1], [0], [0], [1], [0, 0, 1, 1], [], []>} : vector<8x64xbf16>, vector<64x128xbf16>, vector<8x128xf32> -> vector<8x128xf32>
    %c0_21 = arith.constant 0 : index
    %c0_22 = arith.constant 0 : index
    %49 = vector.load %arg9[%c0_21, %c0_22] : memref<1x128xf32, #tpu.memory_space<vmem>>, vector<1x128xf32>
    %50 = vector.broadcast %49 : vector<1x128xf32> to vector<8x128xf32>
    %51 = arith.addf %48, %50 : vector<8x128xf32>
    %52 = math.tanh %51 : vector<8x128xf32>
    %53 = arith.truncf %52 : vector<8x128xf32> to vector<8x128xbf16>
    %c0_23 = arith.constant 0 : index
    %c0_24 = arith.constant 0 : index
    %54 = vector.load %arg10[%c0_23, %c0_24] : memref<128x8xbf16, #tpu.memory_space<vmem>>, vector<128x8xbf16>
    %cst_25 = arith.constant dense<0.000000e+00> : vector<8x8xf32>
    %55 = tpu.matmul %53, %54, %cst_25 {dimension_numbers = #tpu.dot_dimension_numbers<[1], [0], [0], [1], [0, 0, 1, 1], [], []>} : vector<8x128xbf16>, vector<128x8xbf16>, vector<8x8xf32> -> vector<8x8xf32>
    %c0_26 = arith.constant 0 : index
    %c0_27 = arith.constant 0 : index
    %56 = vector.load %arg11[%c0_26, %c0_27] : memref<1x8xf32, #tpu.memory_space<vmem>>, vector<1x8xf32>
    %57 = vector.broadcast %56 : vector<1x8xf32> to vector<8x8xf32>
    %58 = arith.addf %55, %57 : vector<8x8xf32>
    %59 = vector.extract_strided_slice %58 {offsets = [0, 0], sizes = [8, 7], strides = [1, 1]} : vector<8x8xf32> to vector<8x7xf32>
    %cst_28 = arith.constant dense<0xFF800000> : vector<8xf32>
    %60 = vector.multi_reduction <maximumf>, %59, %cst_28 [1] : vector<8x7xf32> to vector<8xf32>
    %61 = vector.shape_cast %60 : vector<8xf32> to vector<8x1xf32>
    %62 = vector.broadcast %61 : vector<8x1xf32> to vector<8x7xf32>
    %63 = arith.subf %59, %62 : vector<8x7xf32>
    %64 = math.exp %63 : vector<8x7xf32>
    %cst_29 = arith.constant dense<0.000000e+00> : vector<8xf32>
    %65 = vector.multi_reduction <add>, %64, %cst_29 [1] : vector<8x7xf32> to vector<8xf32>
    %66 = vector.shape_cast %65 : vector<8xf32> to vector<8x1xf32>
    %67 = math.log %66 : vector<8x1xf32>
    %68 = vector.broadcast %67 : vector<8x1xf32> to vector<8x7xf32>
    %69 = arith.subf %63, %68 : vector<8x7xf32>
    %70 = vector.extract_strided_slice %58 {offsets = [0, 7], sizes = [8, 1], strides = [1, 1]} : vector<8x8xf32> to vector<8x1xf32>
    %cst_30 = arith.constant 0.000000e+00 : f32
    %71 = vector.broadcast %cst_30 : f32 to vector<8x56xf32>
    %72 = tpu.concatenate %69, %70, %45, %71 in 1 : vector<8x7xf32>, vector<8x1xf32>, vector<8x64xf32>, vector<8x56xf32> -> vector<8x128xf32>
    %c0_31 = arith.constant 0 : index
    %c0_32 = arith.constant 0 : index
    %73 = vector.load %arg12[%c0_31, %c0_32] : memref<8x128xf32, #tpu.memory_space<vmem>>, vector<8x128xf32>
    tpu.vector_store %arg12[%c0_31, %c0_32], %72 {strides = array<i32>} : memref<8x128xf32, #tpu.memory_space<vmem>>, vector<8x128xf32>,
    return
  }
  func.func @transform_0(%arg0: i32) -> (i32, i32) {
    %c0_i32 = arith.constant 0 : i32
    %c0_i32_0 = arith.constant 0 : i32
    return %arg0, %c0_i32 : i32, i32
  }
  func.func @transform_1(%arg0: i32) -> (i32, i32) {
    %c0_i32 = arith.constant 0 : i32
    %c0_i32_0 = arith.constant 0 : i32
    %c0_i32_1 = arith.constant 0 : i32
    return %c0_i32, %c0_i32_0 : i32, i32
  }
  func.func @transform_2(%arg0: i32) -> (i32, i32) {
    %c0_i32 = arith.constant 0 : i32
    %c0_i32_0 = arith.constant 0 : i32
    %c0_i32_1 = arith.constant 0 : i32
    return %c0_i32, %c0_i32_0 : i32, i32
  }
  func.func @transform_3(%arg0: i32) -> (i32, i32) {
    %c0_i32 = arith.constant 0 : i32
    %c0_i32_0 = arith.constant 0 : i32
    %c0_i32_1 = arith.constant 0 : i32
    return %c0_i32, %c0_i32_0 : i32, i32
  }
  func.func @transform_4(%arg0: i32) -> (i32, i32) {
    %c0_i32 = arith.constant 0 : i32
    %c0_i32_0 = arith.constant 0 : i32
    %c0_i32_1 = arith.constant 0 : i32
    return %c0_i32, %c0_i32_0 : i32, i32
  }
  func.func @transform_5(%arg0: i32) -> (i32, i32) {
    %c0_i32 = arith.constant 0 : i32
    %c0_i32_0 = arith.constant 0 : i32
    %c0_i32_1 = arith.constant 0 : i32
    return %c0_i32, %c0_i32_0 : i32, i32
  }
  func.func @transform_6(%arg0: i32) -> (i32, i32) {
    %c0_i32 = arith.constant 0 : i32
    %c0_i32_0 = arith.constant 0 : i32
    %c0_i32_1 = arith.constant 0 : i32
    return %c0_i32, %c0_i32_0 : i32, i32
  }
  func.func @transform_7(%arg0: i32) -> (i32, i32) {
    %c0_i32 = arith.constant 0 : i32
    %c0_i32_0 = arith.constant 0 : i32
    %c0_i32_1 = arith.constant 0 : i32
    return %c0_i32, %c0_i32_0 : i32, i32
  }
  func.func @transform_8(%arg0: i32) -> (i32, i32) {
    %c0_i32 = arith.constant 0 : i32
    %c0_i32_0 = arith.constant 0 : i32
    %c0_i32_1 = arith.constant 0 : i32
    return %c0_i32, %c0_i32_0 : i32, i32
  }
  func.func @transform_9(%arg0: i32) -> (i32, i32) {
    %c0_i32 = arith.constant 0 : i32
    %c0_i32_0 = arith.constant 0 : i32
    %c0_i32_1 = arith.constant 0 : i32
    return %c0_i32, %c0_i32_0 : i32, i32
  }
  func.func @transform_10(%arg0: i32) -> (i32, i32) {
    %c0_i32 = arith.constant 0 : i32
    %c0_i32_0 = arith.constant 0 : i32
    %c0_i32_1 = arith.constant 0 : i32
    return %c0_i32, %c0_i32_0 : i32, i32
  }
  func.func @transform_11(%arg0: i32) -> (i32, i32) {
    %c0_i32 = arith.constant 0 : i32
    %c0_i32_0 = arith.constant 0 : i32
    return %arg0, %c0_i32 : i32, i32
  }
}

</mosaic_0001>

<bundles_post_ra>
// kernel: acmodel_block_forward.1
= control target key start
LH: loop header
LB: loop body
LE: loop exit
PB: predicated region body
PF: predicated region fallthrough
CT: control target
= control target key end

     0   :  { %v933_v3 = vmov 0.0   ;;  %vm934_vm0 = vmmov 0   ;;  %s935_s12 = smov 21   ;;  %vm120_vm1 = vcmask 1044480   ;;  %vm70_vm2 = vcmask 171008   ;;  %s1205_s0 = inlined_call_operand.vmem [shape: f32[56,21], index: 0, kind: input, shape index: {}]   ;;  %s1206_s1 = inlined_call_operand.vmem [shape: bf16[42,96], index: 1, kind: input, shape index: {}]   ;;  %s1207_s2 = inlined_call_operand.vmem [shape: f32[1,96], index: 2, kind: input, shape index: {}]   ;;  %s1208_s3 = inlined_call_operand.vmem [shape: bf16[160,64], index: 3, kind: input, shape index: {}]   ;;  %s1209_s5 = inlined_call_operand.vmem [shape: bf16[128,64], index: 5, kind: input, shape index: {}]   ;;  %s1210_s4 = inlined_call_operand.vmem [shape: f32[1,64], index: 4, kind: input, shape index: {}]   ;;  %s1211_s7 = inlined_call_operand.vmem [shape: bf16[64,128], index: 7, kind: input, shape index: {}]   ;;  %s1212_s9 = inlined_call_operand.vmem [shape: bf16[128,8], index: 9, kind: input, shape index: {}]   ;;  %s1213_s6 = inlined_call_operand.vmem [shape: f32[1,64], index: 6, kind: input, shape index: {}]   ;;  %s1214_s8 = inlined_call_operand.vmem [shape: f32[1,128], index: 8, kind: input, shape index: {}]   ;;  %s1215_s10 = inlined_call_operand.vmem [shape: f32[1,8], index: 10, kind: input, shape index: {}]   ;;  %s1216_s11 = inlined_call_operand.vmem [shape: f32[8,128], index: 11, kind: output, shape index: {}]  }
   0x1   :  { %v40_v0 = vld [vmem:[%s1205_s0 + $0x8] sm:$0xff]  ;;  %v41_v1 = vld [vmem:[%s1205_s0 + $0x10] sm:$0xff]  ;;  %v42_v2 = vld [vmem:[%s1205_s0 + $0x18] sm:$0xff]  ;;  %781 = vmatprep.subr.bf16.mxu1 %v933_v3  ;;  %787 = vmatprep.mubr.msk.bf16.mxu1 %vm934_vm0, %v933_v3  ;;  %vm110_vm3 = vcmask 343040   ;;  %v937_v60 = vmov 0   ;;  %vm228_vm4 = vcmask 654336  }
   0x2   :  { %v859_v4 = vpack.i.bf16 %v41_v1, %v40_v0  ;;  %v43_v5 = vld [vmem:[%s1205_s0 + $0x20] sm:$0xff]  ;;  %v44_v6 = vld [vmem:[%s1205_s0 + $0x28] sm:$0xff]  ;;  %v45_v7 = vld [vmem:[%s1205_s0 + $0x30] sm:$0xff]  ;;  %799 = vmatprep.subr.bf16.mxu0 %v933_v3  ;;  %815 = vmatprep.mubr.msk.bf16.mxu0 %vm934_vm0, %v933_v3  ;;  %vm320_vm5 = vcmask 261120   ;;  %vm371_vm6 = vcmask 523264   ;;  %vm682_vm7 = vcmask 56320  }
   0x3   :  { %v869_v8 = vpack.i.bf16 %v45_v7, %v44_v6  ;;  %v894_v9 = vld [vmem:[%s1206_s1] sm:$0xff]   ;;  %v864_v10 = vpack.i.bf16 %v43_v5, %v42_v2  ;;  %v895_v11 = vld [vmem:[%s1206_s1 + $0x8] sm:$0xff]   ;;  %v896_v12 = vld [vmem:[%s1206_s1 + $0x10] sm:$0x1f]   ;;  %s938_s1 = smov 80   ;;  %vm700_vm8 = vcmask 64512  }
   0x4   :  { %860 = vrot.lane.b32.xlu0 %v859_v4, %s935_s12  ;;  %782 = vmatpush3.bf16.msra.mxu1 %v894_v9  ;;  %v122_v13 = vsel %vm120_vm1, %v896_v12, 0  ;;  %v39_v15 = vld [vmem:[%s1205_s0] sm:$0xff]  ;;  %v898_v63 = vld [vmem:[%s1208_s3 + $0x8] sm:$0xff]   ;;  %vm702_vm9 = vcmask 588800  }
   0x5   :  { %870 = vrot.lane.b32.xlu1 %v869_v8, %s935_s12  ;;  %783 = vmatprep.subr.bf16.mxu1 %v933_v3  ;;  %v709_v37 = vld [vmem:[%s1207_s2] ss:$0 sm:$0xff]  ;;  %s936_s2 = smov 112   ;;  %v902_v4 = vld [vmem:[%s1208_s3 + $0x28] sm:$0xff]  }
   0x6   :  { %v897_v61 = vld [vmem:[%s1208_s3] sm:$0xff]   ;;  %v906_v9 = vld [vmem:[%s1208_s3 + $0x48] sm:$0xff]  }
   0x7   :  { %v905_v7 = vld [vmem:[%s1208_s3 + $0x40] sm:$0xff]  }
   0x8   :  { %865 = vrot.lane.b32.xlu0 %v864_v10, %s935_s12  ;;  %784 = vmatpush3.bf16.msra.mxu1 %v895_v11 }
   0x9   :  { %785 = vmatprep.subr.bf16.mxu1 %v933_v3 }
   0xc   :  { %786 = vmatpush3.bf16.msra.mxu1 %v122_v13 }
   0xd   :  { %324 = vmatprep.subr.bf16.mxu1 %v937_v60 }
  0x76   :  { %v861_v14 = vpop.permute.xlu0 %860 }
  0x77   :  { %v863_v16 = vunpack.i.h.bf16 %v861_v14  ;;  %v862_v17 = vunpack.i.l.bf16 %v861_v14  ;;  %v871_v26 = vpop.permute.xlu1 %870 }
  0x78   :  { %v873_v28 = vunpack.i.h.bf16 %v871_v26  ;;  %v872_v29 = vunpack.i.l.bf16 %v871_v26 }
  0x79   :  { %v72_v18 = vsel %vm70_vm2, %v40_v0, %v863_v16  ;;  %v71_v19 = vsel %vm70_vm2, %v39_v15, %v862_v17  ;;  %v899_v0 = vld [vmem:[%s1208_s3 + $0x10] sm:$0xff]  }
  0x7a   :  { %v77_v20 = vpack.c.bf16 %v72_v18, %v71_v19  ;;  %v866_v21 = vpop.permute.xlu0 %865  ;;  %v76_v30 = vsel %vm70_vm2, %v44_v6, %v873_v28  ;;  %v75_v31 = vsel %vm70_vm2, %v43_v5, %v872_v29  ;;  %v903_v5 = vld [vmem:[%s1208_s3 + $0x30] sm:$0xff]   ;;  %v904_v6 = vld [vmem:[%s1208_s3 + $0x38] sm:$0xff]  }
  0x7b   :  { %v868_v22 = vunpack.i.h.bf16 %v866_v21  ;;  %v867_v23 = vunpack.i.l.bf16 %v866_v21  ;;  %v79_v32 = vpack.c.bf16 %v76_v30, %v75_v31 }
  0x7c   :  { %788 = vmatmul.mubr.msk.bf16.vlgmr.msra.gmra.mrb[0].mxu1 %vm110_vm3, %v77_v20 }
  0x7d   :  { %v74_v24 = vsel %vm70_vm2, %v42_v2, %v868_v22  ;;  %v73_v25 = vsel %vm70_vm2, %v41_v1, %v867_v23  ;;  %791 = vmatprep.mubr.msk.bf16.mxu1 %vm934_vm0, %v933_v3  ;;  %325 = vmatpush1.bf16.msra.mxu1 %v897_v61  ;;  %v900_v1 = vld [vmem:[%s1208_s3 + $0x18] sm:$0xff]   ;;  %v901_v2 = vld [vmem:[%s1208_s3 + $0x20] sm:$0xff]   ;;  %v921_v61 = vld [vmem:[%s1212_s9 + $0x10] sm:$0xff]  }
  0x7e   :  { %v78_v27 = vpack.c.bf16 %v74_v24, %v73_v25  ;;  %326 = vmatprep.subr.bf16.mxu1 %v937_v60 }
  0x81   :  { %327 = vmatpush1.bf16.msra.mxu1 %v898_v63  ;;  %v728_v63 = vld [vmem:[%s1213_s6] ss:$0 sm:$0xff] }
  0x82   :  { %328 = vmatprep.subr.bf16.mxu1 %v937_v60 }
  0x84   :  { %792 = vmatmul.mubr.msk.bf16.gmra.mrb[4].mxu1 %vm110_vm3, %v78_v27 }
  0x85   :  { %795 = vmatprep.mubr.msk.bf16.mxu1 %vm934_vm0, %v933_v3  ;;  %329 = vmatpush1.bf16.msra.mxu1 %v899_v0 }
  0x86   :  { %330 = vmatprep.subr.bf16.mxu1 %v937_v60 }
  0x89   :  { %331 = vmatpush1.bf16.msra.mxu1 %v900_v1 }
  0x8a   :  { %332 = vmatprep.subr.bf16.mxu1 %v937_v60 }
  0x8c   :  { %796 = vmatmul.mubr.msk.bf16.gmra.mrb[8].mxu1 %vm110_vm3, %v79_v32 }
  0x8d   :  { %333 = vmatpush1.bf16.msra.mxu1 %v901_v2 }
  0x8e   :  { %334 = vmatprep.subr.bf16.mxu1 %v937_v60 }
  0x91   :  { %335 = vmatpush1.bf16.msra.mxu1 %v902_v4 }
  0x92   :  { %336 = vmatprep.subr.bf16.mxu1 %v937_v60 }
  0x95   :  { %337 = vmatpush1.bf16.msra.mxu1 %v903_v5 }
  0x96   :  { %338 = vmatprep.subr.bf16.mxu1 %v937_v60 }
  0x99   :  { %339 = vmatpush1.bf16.msra.mxu1 %v904_v6 }
  0x9a   :  { %340 = vmatprep.subr.bf16.mxu1 %v937_v60 }
  0x9d   :  { %341 = vmatpush1.bf16.msra.mxu1 %v905_v7 }
  0x9e   :  { %342 = vmatprep.subr.bf16.mxu1 %v937_v60  ;;  %v920_v60 = vld [vmem:[%s1212_s9 + $0x8] sm:$0xff]  }
  0xa1   :  { %343 = vmatpush1.bf16.msra.mxu1 %v906_v9  ;;  %v924_v9 = vld [vmem:[%s1212_s9 + $0x28] sm:$0xff]  }
  0xa2   :  { %819 = vmatprep.subr.bf16.mxu1 %v933_v3 }
 0x14f   :  { %v158_v33 = vpop.f32.mrb[0].mxu1 }
 0x150   :  { %v789_v34 = vpop.f32.mrb[1].mxu1  ;;  %v1059_v45 = vadd.f32 %v709_v37, %v158_v33 }
 0x151   :  { %v161_v35 = vpop.f32.mrb[2].mxu1 }
 0x152   :  { %v790_v36 = vpop.f32.mrb[3].mxu1  ;;  %v1057_v42 = vadd.f32 %v709_v37, %v161_v35  ;;  %v181_v51 = vmax.f32 %v1059_v45, 0.0  ;;  %v907_v35 = vld [vmem:[%s1209_s5] sm:$0xff]  }
 0x153   :  { %800 = vmatpush3.bf16.msra.mxu0 %v907_v35  ;;  %v908_v36 = vld [vmem:[%s1209_s5 + $0x8] sm:$0xff]  }
 0x154   :  { %v182_v48 = vmax.f32 %v1057_v42, 0.0  ;;  %801 = vmatprep.subr.bf16.mxu0 %v933_v3  ;;  %v914_v42 = vld [vmem:[%s1209_s5 + $0x38] sm:$0xff]  }
 0x156   :  { %v884_v55 = vpack.i.bf16 %v182_v48, %v181_v51 }
 0x157   :  { %v166_v38 = vpop.f32.mrb[4].mxu1  ;;  %802 = vmatpush3.bf16.msra.mxu0 %v908_v36 }
 0x158   :  { %v1055_v39 = vadd.f32 %v709_v37, %v166_v38  ;;  %v793_v40 = vpop.f32.mrb[5].mxu1  ;;  %803 = vmatprep.subr.bf16.mxu0 %v933_v3  ;;  %v910_v38 = vld [vmem:[%s1209_s5 + $0x18] sm:$0xff]  }
 0x159   :  { %v169_v41 = vpop.f32.mrb[6].mxu1  ;;  %v912_v40 = vld [vmem:[%s1209_s5 + $0x28] sm:$0xff]  }
 0x15a   :  { %v170_v43 = vadd.f32 %v709_v37, %v169_v41  ;;  %v794_v44 = vpop.f32.mrb[7].mxu1  ;;  %v183_v46 = vmax.f32 %v1055_v39, 0.0  ;;  %v911_v39 = vld [vmem:[%s1209_s5 + $0x20] sm:$0xff]   ;;  %v913_v41 = vld [vmem:[%s1209_s5 + $0x30] sm:$0xff]  }
 0x15b   :  { %v915_v44 = vld [vmem:[%s1211_s7] sm:$0xff]  }
 0x15c   :  { %v184_v47 = vmax.f32 %v170_v43, 0.0  ;;  %v716_v43 = vld [vmem:[%s1210_s4] ss:$0 sm:$0xff]  ;;  %s939_s4 = smov 64  }
 0x15e   :  { %v874_v49 = vpack.i.bf16 %v184_v47, %v183_v46 }
 0x15f   :  { %v174_v50 = vpop.f32.mrb[8].mxu1 }
 0x160   :  { %v175_v52 = vadd.f32 %v709_v37, %v174_v50  ;;  %875 = vrot.lane.b32.xlu1 %v874_v49, %s936_s2  ;;  %v797_v53 = vpop.f32.mrb[9].mxu1 }
 0x161   :  { %v177_v54 = vpop.f32.mrb[10].mxu1 }
 0x162   :  { %v178_v56 = vadd.f32 %v709_v37, %v177_v54  ;;  %v798_v57 = vpop.f32.mrb[11].mxu1  ;;  %v185_v58 = vmax.f32 %v175_v52, 0.0  ;;  %v909_v37 = vld [vmem:[%s1209_s5 + $0x10] sm:$0xff]  }
 0x163   :  { %804 = vmatpush3.bf16.msra.mxu0 %v909_v37  ;;  %v917_v57 = vld [vmem:[%s1211_s7 + $0x10] sm:$0xff]  }
 0x164   :  { %v186_v59 = vmax.f32 %v178_v56, 0.0  ;;  %885 = vrot.lane.b32.xlu1 %v884_v55, %s936_s2  ;;  %805 = vmatprep.subr.bf16.mxu0 %v933_v3 }
 0x166   :  { %v879_v62 = vpack.i.bf16 %v186_v59, %v185_v58 }
 0x167   :  { %806 = vmatpush3.bf16.msra.mxu0 %v910_v38 }
 0x168   :  { %880 = vrot.lane.b32.xlu0 %v879_v62, %s936_s2  ;;  %807 = vmatprep.subr.bf16.mxu0 %v933_v3  ;;  %v922_v62 = vld [vmem:[%s1212_s9 + $0x18] sm:$0xff]  }
 0x16b   :  { %808 = vmatpush3.bf16.msra.mxu0 %v911_v39 }
 0x16c   :  { %809 = vmatprep.subr.bf16.mxu0 %v933_v3 }
 0x16f   :  { %810 = vmatpush3.bf16.msra.mxu0 %v912_v40 }
 0x170   :  { %811 = vmatprep.subr.bf16.mxu0 %v933_v3 }
 0x173   :  { %812 = vmatpush3.bf16.msra.mxu0 %v913_v41 }
 0x174   :  { %813 = vmatprep.subr.bf16.mxu0 %v933_v3 }
 0x177   :  { %814 = vmatpush3.bf16.msra.mxu0 %v914_v42 }
 0x178   :  { %831 = vmatprep.subr.bf16.mxu0 %v933_v3 }
 0x1d2   :  { %v876_v8 = vpop.permute.xlu1 %875 }
 0x1d3   :  { %v878_v10 = vunpack.i.h.bf16 %v876_v8  ;;  %v877_v11 = vunpack.i.l.bf16 %v876_v8  ;;  %v923_v8 = vld [vmem:[%s1212_s9 + $0x20] sm:$0xff]  }
 0x1d5   :  { %v214_v13 = vmax.f32 %v184_v47, %v878_v10  ;;  %v213_v14 = vmax.f32 %v183_v46, %v877_v11  ;;  %v916_v46 = vld [vmem:[%s1211_s7 + $0x8] sm:$0xff]   ;;  %v925_v10 = vld [vmem:[%s1212_s9 + $0x30] sm:$0xff]   ;;  %v926_v11 = vld [vmem:[%s1212_s9 + $0x38] sm:$0xff]  }
 0x1d6   :  { %v886_v22 = vpop.permute.xlu1 %885 }
 0x1d7   :  { %v218_v19 = vmax.f32 %v213_v14, %v214_v13  ;;  %v888_v23 = vunpack.i.h.bf16 %v886_v22  ;;  %v887_v24 = vunpack.i.l.bf16 %v886_v22 }
 0x1d9   :  { %v212_v25 = vmax.f32 %v182_v48, %v888_v23  ;;  %v211_v26 = vmax.f32 %v181_v51, %v887_v24 }
 0x1da   :  { %v881_v12 = vpop.permute.xlu0 %880 }
 0x1db   :  { %v883_v15 = vunpack.i.h.bf16 %v881_v12  ;;  %v882_v16 = vunpack.i.l.bf16 %v881_v12  ;;  %v217_v28 = vmax.f32 %v211_v26, %v212_v25  ;;  %v737_v12 = vld [vmem:[%s1214_s8] ss:$0 sm:$0xff]  ;;  %s940_s8 = smov 8  }
 0x1dd   :  { %v216_v17 = vmax.f32 %v186_v59, %v883_v15  ;;  %v215_v18 = vmax.f32 %v185_v58, %v882_v16  ;;  %v918_v58 = vld [vmem:[%s1211_s7 + $0x18] sm:$0xff]   ;;  %v919_v59 = vld [vmem:[%s1212_s9] sm:$0xff]  }
 0x1df   :  { %v219_v20 = vmax.f32 %v215_v18, %v216_v17 }
 0x1e1   :  { %v889_v21 = vpack.i.bf16 %v219_v20, %v218_v19 }
 0x1e3   :  { %890 = vrot.lane.b32.xlu0 %v889_v21, %s938_s1 }
 0x255   :  { %v891_v27 = vpop.permute.xlu0 %890 }
 0x256   :  { %v893_v29 = vunpack.i.h.bf16 %v891_v27  ;;  %v892_v30 = vunpack.i.l.bf16 %v891_v27 }
 0x258   :  { %v230_v31 = vsel %vm228_vm4, %v218_v19, %v893_v29  ;;  %v229_v32 = vsel %vm228_vm4, %v217_v28, %v892_v30  ;;  %v232_v33 = vpack.c.bf16 %v893_v29, %v892_v30 }
 0x259   :  { %v231_v34 = vpack.c.bf16 %v230_v31, %v229_v32 }
 0x25a   :  { %727 = vmatprep.mubr.msk.bf16.mxu1 %vm320_vm5, %v232_v33 }
 0x25b   :  { %357 = vmatmul.mubr.bf16.vlgmr.msra.gmra.mrb[12].mxu1 %v231_v34 }
 0x25c   :  { %827 = vmatprep.mubr.msk.bf16.mxu1 %vm934_vm0, %v933_v3  ;;  %820 = vmatpush3.bf16.msra.mxu1 %v915_v44 }
 0x25d   :  { %821 = vmatprep.subr.bf16.mxu1 %v933_v3 }
 0x260   :  { %822 = vmatpush3.bf16.msra.mxu1 %v916_v46 }
 0x261   :  { %823 = vmatprep.subr.bf16.mxu1 %v933_v3 }
 0x264   :  { %824 = vmatpush3.bf16.msra.mxu1 %v917_v57 }
 0x265   :  { %825 = vmatprep.subr.bf16.mxu1 %v933_v3 }
 0x268   :  { %826 = vmatpush3.bf16.msra.mxu1 %v918_v58 }
 0x32e   :  { %v358_v45 = vpop.f32.mrb[12].mxu1 }
 0x32f   :  { %v359_v47 = vadd.f32 %v716_v43, %v358_v45  ;;  %v360_v48 = vpop.f32.mrb[13].mxu1 }
 0x330   :  { %v361_v49 = vpop.f32.mrb[14].mxu1 }
 0x331   :  { %v362_v50 = vadd.f32 %v716_v43, %v361_v49  ;;  %v363_v51 = vpop.f32.mrb[15].mxu1  ;;  %v365_v53 = vmax.f32 %v359_v47, 0.0 }
 0x333   :  { %v366_v52 = vmax.f32 %v362_v50, 0.0 }
 0x335   :  { %368 = vrot.lane.b32.xlu1 %v366_v52, %s939_s4 }
 0x3a7   :  { %v369_v54 = vpop.permute.xlu1 %368 }
 0x3a8   :  { %v372_v55 = vsel %vm371_vm6, %v365_v53, %v369_v54 }
 0x3a9   :  { %v373_v56 = vpack.c.bf16 %v372_v55, %v372_v55 }
 0x3ab   :  { %816 = vmatmul.mubr.bf16.vlgmr.msra.gmra.mrb[0].mxu0 %v373_v56 }
 0x3ac   :  { %847 = vmatprep.mubr.msk.bf16.mxu0 %vm934_vm0, %v933_v3  ;;  %832 = vmatpush3.bf16.msra.mxu0 %v919_v59 }
 0x3ad   :  { %833 = vmatprep.subr.bf16.mxu0 %v933_v3 }
 0x3b0   :  { %834 = vmatpush3.bf16.msra.mxu0 %v920_v60 }
 0x3b1   :  { %835 = vmatprep.subr.bf16.mxu0 %v933_v3 }
 0x3b4   :  { %836 = vmatpush3.bf16.msra.mxu0 %v921_v61 }
 0x3b5   :  { %837 = vmatprep.subr.bf16.mxu0 %v933_v3 }
 0x3b8   :  { %838 = vmatpush3.bf16.msra.mxu0 %v922_v62 }
 0x3b9   :  { %839 = vmatprep.subr.bf16.mxu0 %v933_v3 }
 0x3bc   :  { %840 = vmatpush3.bf16.msra.mxu0 %v923_v8 }
 0x3bd   :  { %841 = vmatprep.subr.bf16.mxu0 %v933_v3 }
 0x3c0   :  { %842 = vmatpush3.bf16.msra.mxu0 %v924_v9 }
 0x3c1   :  { %843 = vmatprep.subr.bf16.mxu0 %v933_v3 }
 0x3c4   :  { %844 = vmatpush3.bf16.msra.mxu0 %v925_v10 }
 0x3c5   :  { %845 = vmatprep.subr.bf16.mxu0 %v933_v3  ;;  %v743_v3 = vld [vmem:[%s1215_s10] ss:$0 sm:$0xff] }
 0x3c8   :  { %846 = vmatpush3.bf16.msra.mxu0 %v926_v11 }
 0x47e   :  { %v479_v0 = vpop.f32.mrb[0].mxu0 }
 0x47f   :  { %v480_v1 = vadd.f32 %v728_v63, %v479_v0  ;;  %v817_v2 = vpop.f32.mrb[1].mxu0 }
 0x480   :  { %v482_v4 = vpop.f32.mrb[2].mxu0 }
 0x481   :  { %v485_v5 = vmax.f32 %v480_v1, 0.0  ;;  %v818_v6 = vpop.f32.mrb[3].mxu0 }
 0x483   :  { %v486_v7 = vpack.c.bf16 %v485_v5, %v485_v5 }
 0x485   :  { %828 = vmatmul.mubr.msk.bf16.vlgmr.msra.gmra.mrb[16].mxu1 %vm371_vm6, %v486_v7 }
 0x558   :  { %v563_v13 = vpop.f32.mrb[16].mxu1 }
 0x559   :  { %v564_v14 = vadd.f32 %v737_v12, %v563_v13  ;;  %v829_v15 = vpop.f32.mrb[17].mxu1 }
 0x55a   :  { %v566_v16 = vpop.f32.mrb[18].mxu1 }
 0x55b   :  { %927 = vtanh.f32 %v564_v14  ;;  %v830_v17 = vpop.f32.mrb[19].mxu1 }
 0x565   :  { %v928_v18 = vpop.eup %927 }
 0x566   :  { %v570_v19 = vpack.c.bf16 %v928_v18, %v928_v18 }
 0x568   :  { %848 = vmatmul.mubr.bf16.vlgmr.msra.gmra.mrb[4].mxu0 %v570_v19 }
 0x63b   :  { %v676_v20 = vpop.f32.mrb[4].mxu0 }
 0x63c   :  { %v677_v21 = vadd.f32 %v743_v3, %v676_v20  ;;  %v849_v22 = vpop.f32.mrb[5].mxu0 }
 0x63d   :  { %v679_v23 = vpop.f32.mrb[6].mxu0 }
 0x63e   :  { %v850_v24 = vpop.f32.mrb[7].mxu0  ;;  %v683_v25 = vsel %vm682_vm7, %v677_v21, -inf }
 0x63f   :  { %684 = vmax.xlane.f32.xlu0 %v683_v25 }
 0x655   :  { %696 = vrot.lane.b32.xlu0 %v485_v5, %s940_s8 }
 0x6cc   :  { %v685_v26 = vpop.xlane.xlu0 %684 }
 0x6cd   :  { %v686_v27 = vsub.f32 %v677_v21, %v685_v26 }
 0x6cf   :  { %v687_v28 = vmul.f32 1.442695, %v686_v27 }
 0x6d0   :  { %v697_v35 = vpop.permute.xlu0 %696 }
 0x6d1   :  { %929 = vpow2.f32 %v687_v28 }
 0x6db   :  { %v930_v29 = vpop.eup %929 }
 0x6dc   :  { %v689_v30 = vsel %vm682_vm7, %v930_v29, 0.0 }
 0x6dd   :  { %690 = vadd.xlane.f32.xlu1 %v689_v30 }
 0x76a   :  { %v691_v31 = vpop.xlane.xlu1 %690 }
 0x76b   :  { %931 = vlog2.f32 %v691_v31 }
 0x775   :  { %v932_v32 = vpop.eup %931 }
 0x776   :  { %v693_v33 = vmul.f32 0.6931472, %v932_v32 }
 0x778   :  { %v694_v34 = vsub.f32 %v686_v27, %v693_v33 }
 0x77a   :  { %v699_v36 = vsel %vm682_vm7, %v694_v34, %v677_v21 }
 0x77b   :  { %v701_v37 = vsel %vm700_vm8, %v699_v36, %v697_v35 }
 0x77c   :  { %v703_v38 = vsel %vm702_vm9, %v701_v37, 0.0 }
 0x77d   :  { %704 = vst [vmem:[%s1216_s11] sm:$0xff] %v703_v38 }

</bundles_post_ra>
